<compile_context>
chip_gen: v5e
topology: v5e:2x2
jax: 0.10.0
libtpu: 0.0.40
codegen_flags: <defaults>
</compile_context>

<pallas_src>
import functools
import math

import jax
import jax.numpy as jnp
from jax.experimental import pallas as pl
from jax.experimental.pallas import tpu as pltpu


# ----------------------------- exceptions (mirroring the PyTorch file) -------
class InvalidFlexNegativeDimension(Exception):
    """Flex dimension cannot be negative."""


class InvalidFlexZeroDimension(Exception):
    """Flex dimension cannot be 0."""


class ResolveError(Exception):
    """There was an error resolving the module."""


# ----------------------------- FlexDim ---------------------------------------
class FlexDim:
    def __init__(self, pos: int = 0, dim: int = 1):
        self.pos = pos
        self.dim = dim

    def resolve(self, input_args, input_kwargs):
        d = input_args[self.pos].shape[self.dim]
        if d == 0:
            raise InvalidFlexZeroDimension("Dimension cannot be zero.")
        if d < 0:
            raise InvalidFlexNegativeDimension("Dimension cannot be less than zero.")
        return d

    def __repr__(self):
        return "{}({}, {})".format(self.__class__.__name__, self.pos, self.dim)


# ----------------------------- tiling helpers --------------------------------
_TM_CAP = 256    # output rows per tile
_TN_CAP = 512    # output cols per tile
_TK_CAP = 1024   # reduction depth per tile
# f32 working set at the caps: 2*(256*1024 + 1024*512 + 256*512)*4B ~= 7.3 MiB,
# safely inside scoped VMEM on v5e (16 MiB default), v6e (32 MiB) and v7x
# (32 MiB default / 64 MiB physical).


def _round_up(x: int, m: int) -> int:
    return ((x + m - 1) // m) * m


def _tile_and_pad(dim: int, cap: int, align: int):
    """Pick (tile, padded) with tile % align == 0, padded % tile == 0 and
    tile <= cap (cap assumed to be a multiple of align)."""
    if dim <= cap:
        t = _round_up(dim, align)
        return t, t
    padded = _round_up(dim, align)
    units = padded // align
    max_units = cap // align
    # Prefer a large tile that divides the align-rounded dim exactly (no extra pad).
    for t_units in range(max_units, max_units // 2, -1):
        if units % t_units == 0:
            return t_units * align, padded
    # Fall back to the cap and pad the dim up to a multiple of it.
    return cap, _round_up(dim, cap)


# ----------------------------- Pallas Linear kernels -------------------------
def _linear_kernel_inplace(x_ref, wt_ref, b_ref, o_ref):
    """f32-output path: accumulate directly into the VMEM-resident output block.

    The output index_map ignores k, so o_ref stays in VMEM across the whole
    reduction; bias initializes it at k == 0, no scratch and no epilogue pass.
    """
    @pl.when(pl.program_id(2) == 0)
    def _():
        o_ref[...] = jnp.broadcast_to(b_ref[...], o_ref.shape)

    o_ref[...] += jnp.dot(
        x_ref[...], wt_ref[...], preferred_element_type=jnp.float32
    )


def _linear_kernel_acc(x_ref, wt_ref, b_ref, o_ref, acc_ref):
    """Narrow-output path (e.g. bf16): f32 scratch accumulator, single cast at
    the last K step."""
    k = pl.program_id(2)

    @pl.when(k == 0)
    def _():
        acc_ref[...] = jnp.broadcast_to(b_ref[...], acc_ref.shape)

    acc_ref[...] += jnp.dot(
        x_ref[...], wt_ref[...], preferred_element_type=jnp.float32
    )

    @pl.when(k == pl.num_programs(2) - 1)
    def _():
        o_ref[...] = acc_ref[...].astype(o_ref.dtype)


@functools.partial(jax.jit, static_argnames=("n_out", "tk", "tn"))
def pallas_linear_forward(x, w_t_p, bias_p, *, n_out, tk, tn):
    """y = x @ w_t + bias.

    x:      (M, K)   unpadded input (any batch M)
    w_t_p:  (Kp, Np) weight, pre-transposed + zero-padded once at init
    bias_p: (1, Np)  bias, zero-padded once at init, kept in f32
    """
    M, K = x.shape
    Kp, Np = w_t_p.shape
    compute_dtype = w_t_p.dtype
    out_dtype = x.dtype

    itemsize_c = jnp.dtype(compute_dtype).itemsize
    itemsize_o = jnp.dtype(out_dtype).itemsize
    # Sublane granularity of the M (second-to-last) tile dim: 8 f32, 16 bf16.
    sub = max(8, 32 // min(itemsize_c, itemsize_o))

    tm, Mp = _tile_and_pad(M, _TM_CAP, sub)

    # GEMV-like call with a single (M, N) output block: split N so a second
    # "parallel" block exists for v7x's second TensorCore (no-op on v5e/v6e).
    if Mp <= _TM_CAP and Np // tn == 1 and tn >= 256 and (tn // 2) % 128 == 0:
        tn = tn // 2

    # Pad / cast x only when needed (skips HBM copies for aligned shapes).
    xp = x
    if Mp != M or Kp != K:
        xp = jnp.pad(xp, ((0, Mp - M), (0, Kp - K)))
    if xp.dtype != compute_dtype:
        xp = xp.astype(compute_dtype)

    grid = (Mp // tm, Np // tn, Kp // tk)

    # HBM traffic including re-streaming of x (per N block) and W (per M block).
    cost = pl.CostEstimate(
        flops=2 * Mp * Kp * Np,
        transcendentals=0,
        bytes_accessed=(
            itemsize_c * (Mp * Kp * (Np // tn) + Kp * Np * (Mp // tm))
            + itemsize_o * Mp * Np
            + 4 * Np
        ),
    )

    in_specs = [
        pl.BlockSpec((tm, tk), lambda i, j, k: (i, k)),   # x tile
        pl.BlockSpec((tk, tn), lambda i, j, k: (k, j)),   # weight tile
        pl.BlockSpec((1, tn), lambda i, j, k: (0, j)),    # bias tile
    ]
    out_spec = pl.BlockSpec((tm, tn), lambda i, j, k: (i, j))

    if out_dtype == jnp.float32:
        kernel = _linear_kernel_inplace
        scratch_shapes = []
        acc_bytes = 0
    else:
        kernel = _linear_kernel_acc
        scratch_shapes = [pltpu.VMEM((tm, tn), jnp.float32)]
        acc_bytes = tm * tn * 4

    # Double-buffered tiles + accumulator + bias, with 2x headroom; capped so
    # it stays valid on v7x's 64 MiB physical VMEM.
    working = (
        2 * (tm * tk * itemsize_c + tk * tn * itemsize_c + tm * tn * itemsize_o)
        + acc_bytes
        + 2 * tn * 4
    )
    vmem_limit = min(48 * 1024 * 1024, max(2 * working, 16 * 1024 * 1024))

    out = pl.pallas_call(
        kernel,
        out_shape=jax.ShapeDtypeStruct((Mp, Np), out_dtype),
        grid_spec=pltpu.PrefetchScalarGridSpec(
            num_scalar_prefetch=0,
            grid=grid,
            in_specs=in_specs,
            out_specs=out_spec,
            scratch_shapes=scratch_shapes,
        ),
        compiler_params=pltpu.CompilerParams(
            dimension_semantics=("parallel", "parallel", "arbitrary"),
            vmem_limit_bytes=vmem_limit,
        ),
        cost_estimate=cost,
    )(xp, w_t_p, bias_p)

    if Mp != M or Np != n_out:
        out = out[:M, :n_out]
    return out


class PallasLinear:
    """JAX/Pallas stand-in for torch.nn.Linear (the module FlexBlock resolves to).

    The weight is transposed to the lane-dense (in, out) layout and zero-padded
    to 128-aligned (Kp, Np) exactly once here, so the per-call jitted forward
    never touches the weight other than streaming it through the kernel.
    """

    def __init__(self, in_features: int, out_features: int, key=None,
                 dtype=jnp.float32):
        if in_features <= 0 or out_features <= 0:
            raise ValueError("in_features / out_features must be positive")
        if key is None:
            key = jax.random.PRNGKey(0)
        kw, kb = jax.random.split(key)

        self.in_features = in_features
        self.out_features = out_features
        self.dtype = dtype

        # Tile plan for K (reduction) and N (output) is fixed at init so the
        # weight/bias padding happens exactly once, outside the hot path.
        self.tk, self.Kp = _tile_and_pad(in_features, _TK_CAP, 128)
        self.tn, self.Np = _tile_and_pad(out_features, _TN_CAP, 128)

        bound = 1.0 / math.sqrt(in_features)  # torch Linear default init range
        w = jax.random.uniform(
            kw, (out_features, in_features), jnp.float32, minval=-bound, maxval=bound
        )
        b = jax.random.uniform(
            kb, (out_features,), jnp.float32, minval=-bound, maxval=bound
        )

        w_t = jnp.pad(
            w.T, ((0, self.Kp - in_features), (0, self.Np - out_features))
        )
        self.weight_t = w_t.astype(dtype)                               # (Kp, Np)
        self.bias = jnp.pad(b, (0, self.Np - out_features)).reshape(1, self.Np)
        # bias kept in f32: added inside the f32 accumulation, then cast once.

    def __call__(self, x):
        return pallas_linear_forward(
            x, self.weight_t, self.bias,
            n_out=self.out_features, tk=self.tk, tn=self.tn,
        )


# ----------------------------- FlexBlock --------------------------------------
class FlexBlock:
    """Flexible block resolved upon the first forward call with an example.

    Reproduces the PyTorch FlexBlock.forward semantics: resolve FlexDim args
    from the example input, construct the wrapped module, then delegate.
    """
    # TODO(synk): torch's _apply()/._apply_history device-cast replay has no Pallas/JAX analog.

    def __init__(self, module_fn, *args, **kwargs):
        self.module = module_fn
        self.args = args
        self.kwargs = kwargs
        self.resolved_module = None
        self.__resolved = False

    @property
    def is_resolved(self):
        return self.__resolved

    def resolve_args(self, input_args, input_kwargs):
        rargs = []
        for a in self.args:
            if isinstance(a, FlexDim):
                rargs.append(a.resolve(input_args, input_kwargs))
            elif a is FlexDim:
                raise ValueError(
                    "Found {}. Initialize FlexDim to use flexible dimensions.".format(a)
                )
            else:
                rargs.append(a)
        return rargs

    def resolve_kwargs(self, input_args, input_kwargs):
        return self.kwargs

    def resolve(self, args, kwargs):
        resolved_args = self.resolve_args(args, kwargs)
        resolved_kwargs = self.resolve_kwargs(args, kwargs)
        self.__resolved = True
        try:
            self.resolved_module = self.module(*resolved_args, **resolved_kwargs)
        except Exception as e:
            raise ResolveError(
                "There was an error resolving module {}".format(self.module)
            ) from e

    def forward(self, *args, **kwargs):
        if not self.is_resolved:
            self.resolve(args, kwargs)
        return self.resolved_module(*args, **kwargs)

    __call__ = forward


# ----------------------------- demo / check -----------------------------------
if __name__ == "__main__":
    key = jax.random.PRNGKey(0)
    kx1, kx2, kx3 = jax.random.split(key, 3)

    # ---- case 1: small f32 shapes (single-tile grid after padding) ----------
    B, D_IN, D_OUT = 8, 32, 128
    x = jax.random.normal(kx1, (B, D_IN), dtype=jnp.float32)

    block = FlexBlock(PallasLinear, FlexDim(pos=0, dim=1), D_OUT)
    assert not block.is_resolved

    y = jax.block_until_ready(block(x))      # resolves PallasLinear(32, 128)
    assert block.is_resolved
    assert y.shape == (B, D_OUT)

    m1 = block.resolved_module
    wt1 = m1.weight_t[:D_IN, :D_OUT]
    b1 = m1.bias[0, :D_OUT]
    y_ref = jnp.dot(x, wt1, precision=jax.lax.Precision.HIGHEST) + b1
    assert jnp.allclose(y, y_ref, atol=2e-2, rtol=2e-2), "case 1 mismatch"

    # ---- case 2: K-tiled accumulate-into-output path (2 K-steps, 2 N blocks)
    B2, D_IN2, D_OUT2 = 16, 2048, 256   # Kp=2048, tk=1024 -> grid (1, 2, 2)
    x2 = jax.random.normal(kx2, (B2, D_IN2), dtype=jnp.float32)

    block2 = FlexBlock(PallasLinear, FlexDim(pos=0, dim=1), D_OUT2)
    y2 = jax.block_until_ready(block2(x2))
    assert y2.shape == (B2, D_OUT2)

    m2 = block2.resolved_module
    y2_ref = (
        jnp.dot(x2, m2.weight_t[:D_IN2, :D_OUT2],
                precision=jax.lax.Precision.HIGHEST)
        + m2.bias[0, :D_OUT2]
    )
    assert jnp.allclose(y2, y2_ref, atol=2e-2, rtol=2e-2), "case 2 mismatch"

    # ---- case 3: bf16 operand path (native bf16 MXU on v6e/v7x) --------------
    B3, D_IN3, D_OUT3 = 8, 256, 256
    x3 = jax.random.normal(kx3, (B3, D_IN3), dtype=jnp.float32).astype(jnp.bfloat16)

    block3 = FlexBlock(PallasLinear, FlexDim(pos=0, dim=1), D_OUT3,
                       dtype=jnp.bfloat16)
    y3 = jax.block_until_ready(block3(x3))
    assert y3.shape == (B3, D_OUT3)
    assert y3.dtype == jnp.bfloat16

    m3 = block3.resolved_module
    y3_ref = (
        jnp.dot(x3.astype(jnp.float32),
                m3.weight_t[:D_IN3, :D_OUT3].astype(jnp.float32),
                precision=jax.lax.Precision.HIGHEST)
        + m3.bias[0, :D_OUT3]
    )
    assert jnp.allclose(y3.astype(jnp.float32), y3_ref, atol=6e-2, rtol=6e-2), \
        "case 3 mismatch"

    print("KERNEL_OK")
</pallas_src>

<mosaic_0001>
module attributes {stable_mosaic.version = 11 : i64} {
  func.func @_linear_kernel_inplace(%arg0: i32, %arg1: i32, %arg2: i32, %arg3: memref<8x128xf32, #tpu.memory_space<vmem>>, %arg4: memref<128x128xf32, #tpu.memory_space<vmem>>, %arg5: memref<1x128xf32, #tpu.memory_space<vmem>>, %arg6: memref<8x128xf32, #tpu.memory_space<vmem>>) attributes {dimension_semantics = [#tpu.dimension_semantics<parallel>, #tpu.dimension_semantics<parallel>, #tpu.dimension_semantics<arbitrary>], iteration_bounds = array<i64: 1, 1, 1>, scalar_prefetch = 0 : i64, scratch_operands = 0 : i64, tpu.core_type = #tpu.core_type<tc>, window_params = [{transform_indices = @transform_0, window_bounds = array<i64: 8, 128>}, {transform_indices = @transform_1, window_bounds = array<i64: 128, 128>}, {transform_indices = @transform_2, window_bounds = array<i64: 1, 128>}, {transform_indices = @transform_3, window_bounds = array<i64: 8, 128>}]} {
    %c0_i32 = arith.constant 0 : i32
    %0 = arith.cmpi eq, %arg2, %c0_i32 : i32
    %1 = arith.extui %0 : i1 to i32
    %c0_i32_0 = arith.constant 0 : i32
    %2 = arith.cmpi ne, %1, %c0_i32_0 : i32
    scf.if %2 {
      %c0_8 = arith.constant 0 : index
      %c0_9 = arith.constant 0 : index
      %9 = vector.load %arg5[%c0_8, %c0_9] : memref<1x128xf32, #tpu.memory_space<vmem>>, vector<1x128xf32>
      %10 = vector.shape_cast %9 : vector<1x128xf32> to vector<1x128xf32>
      %11 = vector.broadcast %10 : vector<1x128xf32> to vector<8x128xf32>
      %c0_10 = arith.constant 0 : index
      %c0_11 = arith.constant 0 : index
      %12 = vector.load %arg6[%c0_10, %c0_11] : memref<8x128xf32, #tpu.memory_space<vmem>>, vector<8x128xf32>
      tpu.vector_store %arg6[%c0_10, %c0_11], %11 {strides = array<i32>} : memref<8x128xf32, #tpu.memory_space<vmem>>, vector<8x128xf32>,
    } else {
    }
    %c0 = arith.constant 0 : index
    %c0_1 = arith.constant 0 : index
    %3 = vector.load %arg6[%c0, %c0_1] : memref<8x128xf32, #tpu.memory_space<vmem>>, vector<8x128xf32>
    %c0_2 = arith.constant 0 : index
    %c0_3 = arith.constant 0 : index
    %4 = vector.load %arg3[%c0_2, %c0_3] : memref<8x128xf32, #tpu.memory_space<vmem>>, vector<8x128xf32>
    %c0_4 = arith.constant 0 : index
    %c0_5 = arith.constant 0 : index
    %5 = vector.load %arg4[%c0_4, %c0_5] : memref<128x128xf32, #tpu.memory_space<vmem>>, vector<128x128xf32>
    %cst = arith.constant dense<0.000000e+00> : vector<8x128xf32>
    %6 = tpu.matmul %4, %5, %cst {dimension_numbers = #tpu.dot_dimension_numbers<[1], [0], [0], [1], [0, 0, 1, 1], [], []>} : vector<8x128xf32>, vector<128x128xf32>, vector<8x128xf32> -> vector<8x128xf32>
    %7 = arith.addf %3, %6 : vector<8x128xf32>
    %c0_6 = arith.constant 0 : index
    %c0_7 = arith.constant 0 : index
    %8 = vector.load %arg6[%c0_6, %c0_7] : memref<8x128xf32, #tpu.memory_space<vmem>>, vector<8x128xf32>
    tpu.vector_store %arg6[%c0_6, %c0_7], %7 {strides = array<i32>} : memref<8x128xf32, #tpu.memory_space<vmem>>, vector<8x128xf32>,
    return
  }
  func.func @transform_0(%arg0: i32, %arg1: i32, %arg2: i32) -> (i32, i32) {
    %c0_i32 = arith.constant 0 : i32
    return %arg0, %arg2 : i32, i32
  }
  func.func @transform_1(%arg0: i32, %arg1: i32, %arg2: i32) -> (i32, i32) {
    %c0_i32 = arith.constant 0 : i32
    return %arg2, %arg1 : i32, i32
  }
  func.func @transform_2(%arg0: i32, %arg1: i32, %arg2: i32) -> (i32, i32) {
    %c0_i32 = arith.constant 0 : i32
    %c0_i32_0 = arith.constant 0 : i32
    return %c0_i32, %arg1 : i32, i32
  }
  func.func @transform_3(%arg0: i32, %arg1: i32, %arg2: i32) -> (i32, i32) {
    %c0_i32 = arith.constant 0 : i32
    return %arg0, %arg1 : i32, i32
  }
}

</mosaic_0001>

<bundles_post_ra>
// kernel: pallas_linear_forward.1
= control target key start
LH: loop header
LB: loop body
LE: loop exit
PB: predicated region body
PF: predicated region fallthrough
CT: control target
= control target key end

     0   :  { %8 = vsyncpa [#allocation3], 0  ;;  %s190_s0 = inlined_call_operand.vmem [shape: f32[8,128], index: 0, kind: input, shape index: {}]   ;;  %s191_s1 = inlined_call_operand.hbm [shape: f32[128,128], index: 1, kind: input, shape index: {}]   ;;  %s192_s2 = inlined_call_operand.vmem [shape: f32[1,128], index: 2, kind: input, shape index: {}]   ;;  %s193_s3 = inlined_call_operand.hbm [shape: f32[8,128], index: 3, kind: output, shape index: {}]  }
   0x1   :  { %9 = vsyncpa [#allocation4], 0  ;;  %s16_s14 = sshll.u32 %s191_s1, 4  ;;  %s154_s15 = smov [#allocation2]   ;;  %s17_s14 = int_to_ptr.hbm [resolvable:$true] %s16_s14 }
   0x2   :  { %s18_s16 = sshll.u32 %s154_s15, 4  ;;  %s155_s17 = smov 128   ;;  %s19_s16 = int_to_ptr.vmem [resolvable:$true] %s18_s16 }
   0x3   :  { %s156_s18 = smov 8  }
   0x4   :  { %24 = dma.hbm_to_vmem [thread:$0]  %s17_s14, 2048, %s19_s16, [#allocation3], %s155_s17, %s155_s17, %s156_s18  }
   0x5   :  { %150 = dma.done.wait [#allocation3], 2048  }
   0x6   :  { %151 = vsyncadd [#allocation3], 4294965248  ;;  %v57_v0 = vld [vmem:[#allocation2 + $0x78] sm:$0xff]  ;;  %v56_v1 = vld [vmem:[#allocation2 + $0x70] sm:$0xff]  ;;  %s157_s22 = smov [#allocation5]   ;;  %s87_s26 = sshll.u32 %s193_s3, 4  ;;  %s88_s26 = int_to_ptr.hbm [resolvable:$true] %s87_s26 }
   0x7   :  { %58 = vmatpush.msra.mxu0 %v57_v0  ;;  %v55_v2 = vld [vmem:[#allocation2 + $0x68] sm:$0xff]  ;;  %v54_v3 = vld [vmem:[#allocation2 + $0x60] sm:$0xff]  ;;  %v53_v4 = vld [vmem:[#allocation2 + $0x58] sm:$0xff]  ;;  %s85_s23 = sshll.u32 %s157_s22, 4  ;;  %s86_s23 = int_to_ptr.vmem [resolvable:$true] %s85_s23 }
   0x8   :  { %v52_v5 = vld [vmem:[#allocation2 + $0x50] sm:$0xff]  ;;  %v51_v6 = vld [vmem:[#allocation2 + $0x48] sm:$0xff]  ;;  %v50_v7 = vld [vmem:[#allocation2 + $0x40] sm:$0xff] }
   0x9   :  { %59 = vmatpush.msra.mxu0 %v56_v1  ;;  %v49_v8 = vld [vmem:[#allocation2 + $0x38] sm:$0xff]  ;;  %v48_v9 = vld [vmem:[#allocation2 + $0x30] sm:$0xff]  ;;  %v47_v10 = vld [vmem:[#allocation2 + $0x28] sm:$0xff] }
   0xa   :  { %v46_v11 = vld [vmem:[#allocation2 + $0x20] sm:$0xff]  ;;  %v45_v12 = vld [vmem:[#allocation2 + $0x18] sm:$0xff]  ;;  %v44_v13 = vld [vmem:[#allocation2 + $0x10] sm:$0xff] }
   0xb   :  { %60 = vmatpush.msra.mxu0 %v55_v2  ;;  %v43_v14 = vld [vmem:[#allocation2 + $0x8] sm:$0xff]  ;;  %v42_v15 = vld [vmem:[#allocation2] sm:$0xff] }
   0xc   :  { %v41_v16 = vld [vmem:[%s190_s0] sm:$0xff] }
   0xd   :  { %61 = vmatpush.msra.mxu0 %v54_v3  ;;  %v101_v17 = vld [vmem:[%s192_s2] ss:$0 sm:$0xff] }
   0xf   :  { %62 = vmatpush.msra.mxu0 %v53_v4 }
  0x11   :  { %63 = vmatpush.msra.mxu0 %v52_v5 }
  0x13   :  { %64 = vmatpush.msra.mxu0 %v51_v6 }
  0x15   :  { %65 = vmatpush.msra.mxu0 %v50_v7 }
  0x17   :  { %66 = vmatpush.msra.mxu0 %v49_v8 }
  0x19   :  { %67 = vmatpush.msra.mxu0 %v48_v9 }
  0x1b   :  { %68 = vmatpush.msra.mxu0 %v47_v10 }
  0x1d   :  { %69 = vmatpush.msra.mxu0 %v46_v11 }
  0x1f   :  { %70 = vmatpush.msra.mxu0 %v45_v12 }
  0x21   :  { %71 = vmatpush.msra.mxu0 %v44_v13 }
  0x23   :  { %72 = vmatpush.msra.mxu0 %v43_v14 }
  0x25   :  { %73 = vmatpush.msra.mxu0 %v42_v15 }
  0x26   :  { %74 = vmatmul.f32.vlgmr.msra.gmra.mxu0 %v41_v16 }
  0xa3   :  { %v75_v18 = vpop.f32.mrf.mxu0 }
  0xa4   :  { %v78_v19 = vadd.f32 %v101_v17, %v75_v18 }
  0xa6   :  { %79 = vst [vmem:[#allocation5] sm:$0xff] %v78_v19 }
  0xa7   :  { %90 = dma.vmem_to_hbm [thread:$0]  %s86_s23, 128, %s88_s26, [#allocation4]  }
  0xa8   :  { %152 = dma.done.wait [#allocation4], 128  }
  0xa9   :  { %153 = vsyncadd [#allocation4], 4294967168 }
  0xaa   :  { %95 = vsyncpa [#allocation3], 1 }
  0xab   :  { %96 = vsyncpa [#allocation4], 1 }

</bundles_post_ra>
